<compile_context>
chip_gen: v7x
topology: tpu7x:2x2x1
jax: 0.10.0
libtpu: 0.0.40
codegen_flags: <defaults>
</compile_context>

<pallas_src>
import numpy as np
import jax
import jax.numpy as jnp
from jax.experimental import pallas as pl
from jax.experimental.pallas import tpu as pltpu

KERNEL_SIZE = 11
SIGMA = 1.5
PAD = (KERNEL_SIZE - 1) // 2
K1, K2 = 0.01, 0.03
N_MOM = 5  # x, y, x*x, y*y, x*y


def _gaussian_1d(kernel_size: int, sigma: float) -> np.ndarray:
    # identical to torchmetrics._gaussian
    dist = np.arange((1 - kernel_size) / 2.0, (1 + kernel_size) / 2.0, 1.0, dtype=np.float64)
    g = np.exp(-((dist / sigma) ** 2) / 2.0)
    return (g / g.sum()).astype(np.float32)


def _banded_conv_matrices(H: int, W: int):
    """Banded matrices so that  Mh @ (q @ Mw)  equals the 'valid' separable
    Gaussian conv of the reflect-padded image restricted to the torchmetrics
    crop [PAD:H-PAD, PAD:W-PAD].  Every window in that region lies fully inside
    the original image, so the reflected border never contributes."""
    w = _gaussian_1d(KERNEL_SIZE, SIGMA)
    Ho, Wo = H - 2 * PAD, W - 2 * PAD
    mh = np.zeros((Ho, H), np.float32)
    for i in range(Ho):
        mh[i, i:i + KERNEL_SIZE] = w
    mw = np.zeros((W, Wo), np.float32)
    for j in range(Wo):
        mw[j:j + KERNEL_SIZE, j] = w
    return mh, mw


def _physical_vmem_bytes() -> int:
    try:
        info = pltpu.get_tpu_info()
        return int(getattr(info, "vmem_capacity_bytes", 128 * 2**20))
    except Exception:
        return 128 * 2**20


def _step_bytes(cb: int, H: int, W: int, itemsize: int) -> int:
    """Rough per-grid-step VMEM working set for a channel block of size cb."""
    Ho, Wo = H - 2 * PAD, W - 2 * PAD
    interm = 30 * cb * H * W * 4                     # f32 intermediates (conservative)
    inputs = 2 * 2 * cb * H * W * itemsize           # 2 inputs, double-buffered
    mats = 2 * (Ho * H + W * Wo) * 4                 # Mh/Mw (double-buffered)
    out = 2 * 8 * 128 * 4
    return interm + inputs + mats + out


def _make_ssim_kernel(Cb, C, H, W, data_range):
    c1 = float((K1 * data_range) ** 2)
    c2 = float((K2 * data_range) ** 2)
    Ho, Wo = H - 2 * PAD, W - 2 * PAD
    inv_n = 1.0 / float(C * Ho * Wo)   # per-image mean over C*Ho*Wo elements

    def kernel(x_ref, y_ref, mh_ref, mw_ref, out_ref):
        # grid = (B, C//Cb): one (image, channel-block) per step, no cross-step
        # dependency -> both grid axes are "parallel".
        x = x_ref[0].astype(jnp.float32).reshape(Cb * H, W)   # (Cb*H, W)
        y = y_ref[0].astype(jnp.float32).reshape(Cb * H, W)
        mh = mh_ref[...]                                       # (Ho, H)
        mw = mw_ref[...]                                       # (W, Wo)

        # ---- Stage 1: one fat matmul for all 5 moments of all Cb channels ----
        # Row layout: block k = m*Cb + c  (moment m, channel c), each H rows.
        q = jnp.concatenate([x, y, x * x, y * y, x * y], axis=0)   # (5*Cb*H, W)
        t = jnp.dot(q, mw, preferred_element_type=jnp.float32)     # (5*Cb*H, Wo)

        # ---- Re-lay row blocks side-by-side along lanes, then one fat Mh matmul
        t2 = jnp.concatenate(
            [t[k * H:(k + 1) * H, :] for k in range(N_MOM * Cb)], axis=1)  # (H, 5*Cb*Wo)
        u = jnp.dot(mh, t2, preferred_element_type=jnp.float32)    # (Ho, 5*Cb*Wo)

        # Moment m occupies lane columns [m*Cb*Wo, (m+1)*Cb*Wo); matching
        # positions across moment slices are the same (channel, pixel).
        cw = Cb * Wo
        mu_x = u[:, 0 * cw:1 * cw]
        mu_y = u[:, 1 * cw:2 * cw]
        e_xx = u[:, 2 * cw:3 * cw]
        e_yy = u[:, 3 * cw:4 * cw]
        e_xy = u[:, 4 * cw:5 * cw]

        mu_x2 = mu_x * mu_x
        mu_y2 = mu_y * mu_y
        mu_xy = mu_x * mu_y
        s_xx = e_xx - mu_x2
        s_yy = e_yy - mu_y2
        s_xy = e_xy - mu_xy

        num = (2.0 * mu_xy + c1) * (2.0 * s_xy + c2)
        den = (mu_x2 + mu_y2 + c1) * (s_xx + s_yy + c2)
        ssim_map = num / den                      # exact division (1e-5 tolerance)

        partial = jnp.sum(ssim_map) * inv_n       # this block's share of the per-image mean
        out_ref[...] = jnp.zeros_like(out_ref) + partial   # lane-dense unmasked store

    return kernel


def ssim_loss(pred, target, data_range=1.0):
    """Returns 1 - SSIM(pred, target) as a scalar (lower is better)."""
    if isinstance(pred, dict):
        pred = pred["pred"]
    B, C, H, W = pred.shape
    assert target.shape == pred.shape
    assert H >= KERNEL_SIZE and W >= KERNEL_SIZE
    Ho, Wo = H - 2 * PAD, W - 2 * PAD

    mh_np, mw_np = _banded_conv_matrices(H, W)
    mh = jnp.asarray(mh_np)
    mw = jnp.asarray(mw_np)

    itemsize = int(np.dtype(pred.dtype).itemsize)
    phys = _physical_vmem_bytes()
    cap = int(phys * 3 // 4)            # ~48 MiB on v7x, ~96 MiB on v5e/v6e

    # Channel blocking: largest divisor of C whose working set fits half the cap.
    budget = cap // 2
    Cb = 1
    for d in range(1, C + 1):
        if C % d == 0 and _step_bytes(d, H, W, itemsize) <= budget:
            Cb = d
    n_cb = C // Cb

    step = _step_bytes(Cb, H, W, itemsize)
    vmem_limit = int(min(cap, max(32 * 2**20, int(1.5 * step))))
    # TODO(synk): if step > cap even at Cb=1 (very large single image), add row
    # tiling with a 2*PAD halo + band-sparse per-tile Mh/Mw instead of hoping
    # the compiler squeezes the full-image working set in.

    kernel = _make_ssim_kernel(Cb, C, H, W, data_range)
    out = pl.pallas_call(
        kernel,
        out_shape=jax.ShapeDtypeStruct((B, n_cb, 8, 128), jnp.float32),
        grid_spec=pltpu.PrefetchScalarGridSpec(
            num_scalar_prefetch=0,
            grid=(B, n_cb),
            in_specs=[
                pl.BlockSpec((1, Cb, H, W), lambda b, g: (b, g, 0, 0)),   # pred
                pl.BlockSpec((1, Cb, H, W), lambda b, g: (b, g, 0, 0)),   # target
                pl.BlockSpec((Ho, H), lambda b, g: (0, 0)),               # Mh (resident)
                pl.BlockSpec((W, Wo), lambda b, g: (0, 0)),               # Mw (resident)
            ],
            out_specs=pl.BlockSpec((1, 1, 8, 128), lambda b, g: (b, g, 0, 0)),
        ),
        compiler_params=pltpu.CompilerParams(
            dimension_semantics=("parallel", "parallel"),
            vmem_limit_bytes=vmem_limit,
        ),
    )(pred, target, mh, mw)

    per_image_ssim = jnp.sum(out[:, :, 0, 0], axis=1)     # (B,) sum over channel blocks
    return 1.0 - jnp.mean(per_image_ssim)


def _ssim_loss_ref(pred, target, data_range=1.0):
    """Pure-JAX reference (reflect pad + depthwise 2D conv + crop), matching
    torchmetrics semantics, for correctness checking."""
    B, C, H, W = pred.shape
    w = _gaussian_1d(KERNEL_SIZE, SIGMA)
    k2d = jnp.asarray(np.outer(w, w), jnp.float32)
    kern = jnp.tile(k2d[None, None], (C, 1, 1, 1))   # (C, 1, k, k) depthwise
    pad_cfg = ((0, 0), (0, 0), (PAD, PAD), (PAD, PAD))
    xp = jnp.pad(pred.astype(jnp.float32), pad_cfg, mode="reflect")
    yp = jnp.pad(target.astype(jnp.float32), pad_cfg, mode="reflect")

    def conv(q):
        return jax.lax.conv_general_dilated(
            q, kern, (1, 1), "VALID",
            dimension_numbers=("NCHW", "OIHW", "NCHW"),
            feature_group_count=C)

    mu_x, mu_y = conv(xp), conv(yp)
    e_xx, e_yy, e_xy = conv(xp * xp), conv(yp * yp), conv(xp * yp)
    c1 = (K1 * data_range) ** 2
    c2 = (K2 * data_range) ** 2
    s_xx = e_xx - mu_x ** 2
    s_yy = e_yy - mu_y ** 2
    s_xy = e_xy - mu_x * mu_y
    m = ((2 * mu_x * mu_y + c1) * (2 * s_xy + c2)) / \
        ((mu_x ** 2 + mu_y ** 2 + c1) * (s_xx + s_yy + c2))
    m = m[..., PAD:-PAD, PAD:-PAD]
    return 1.0 - jnp.mean(m.reshape(B, -1).mean(-1))


if __name__ == "__main__":
    B, C, H, W = 2, 4, 16, 16
    key = jax.random.PRNGKey(0)
    k1, k2 = jax.random.split(key)
    pred = jax.random.uniform(k1, (B, C, H, W), dtype=jnp.float32)
    target = jax.random.uniform(k2, (B, C, H, W), dtype=jnp.float32)

    loss = ssim_loss({"pred": pred}, target, data_range=1.0)
    loss = jax.block_until_ready(loss)

    ref = jax.block_until_ready(_ssim_loss_ref(pred, target, data_range=1.0))
    assert np.isfinite(float(loss))
    np.testing.assert_allclose(float(loss), float(ref), rtol=1e-5, atol=1e-5)
    print("KERNEL_OK")
</pallas_src>

<mosaic_0001>
module attributes {stable_mosaic.version = 11 : i64} {
  func.func @kernel(%arg0: i32, %arg1: i32, %arg2: memref<1x4x16x16xf32, #tpu.memory_space<vmem>>, %arg3: memref<1x4x16x16xf32, #tpu.memory_space<vmem>>, %arg4: memref<6x16xf32, #tpu.memory_space<vmem>>, %arg5: memref<16x6xf32, #tpu.memory_space<vmem>>, %arg6: memref<1x1x8x128xf32, #tpu.memory_space<vmem>>) attributes {dimension_semantics = [#tpu.dimension_semantics<parallel>, #tpu.dimension_semantics<parallel>], iteration_bounds = array<i64: 2, 1>, scalar_prefetch = 0 : i64, scratch_operands = 0 : i64, tpu.core_type = #tpu.core_type<tc>, window_params = [{transform_indices = @transform_0, window_bounds = array<i64: 1, 4, 16, 16>}, {transform_indices = @transform_1, window_bounds = array<i64: 1, 4, 16, 16>}, {pipeline_mode = #tpu.pipeline_mode<synchronous>, transform_indices = @transform_2, window_bounds = array<i64: 6, 16>}, {pipeline_mode = #tpu.pipeline_mode<synchronous>, transform_indices = @transform_3, window_bounds = array<i64: 16, 6>}, {transform_indices = @transform_4, window_bounds = array<i64: 1, 1, 8, 128>}]} {
    %c0 = arith.constant 0 : index
    %c0_0 = arith.constant 0 : index
    %c0_1 = arith.constant 0 : index
    %c0_2 = arith.constant 0 : index
    %0 = vector.load %arg2[%c0, %c0_0, %c0_1, %c0_2] : memref<1x4x16x16xf32, #tpu.memory_space<vmem>>, vector<1x4x16x16xf32>
    %1 = vector.shape_cast %0 : vector<1x4x16x16xf32> to vector<4x16x16xf32>
    %2 = vector.shape_cast %1 : vector<4x16x16xf32> to vector<64x16xf32>
    %c0_3 = arith.constant 0 : index
    %c0_4 = arith.constant 0 : index
    %c0_5 = arith.constant 0 : index
    %c0_6 = arith.constant 0 : index
    %3 = vector.load %arg3[%c0_3, %c0_4, %c0_5, %c0_6] : memref<1x4x16x16xf32, #tpu.memory_space<vmem>>, vector<1x4x16x16xf32>
    %4 = vector.shape_cast %3 : vector<1x4x16x16xf32> to vector<4x16x16xf32>
    %5 = vector.shape_cast %4 : vector<4x16x16xf32> to vector<64x16xf32>
    %c0_7 = arith.constant 0 : index
    %c0_8 = arith.constant 0 : index
    %6 = vector.load %arg4[%c0_7, %c0_8] : memref<6x16xf32, #tpu.memory_space<vmem>>, vector<6x16xf32>
    %c0_9 = arith.constant 0 : index
    %c0_10 = arith.constant 0 : index
    %7 = vector.load %arg5[%c0_9, %c0_10] : memref<16x6xf32, #tpu.memory_space<vmem>>, vector<16x6xf32>
    %8 = arith.mulf %2, %2 : vector<64x16xf32>
    %9 = arith.mulf %5, %5 : vector<64x16xf32>
    %10 = arith.mulf %2, %5 : vector<64x16xf32>
    %11 = tpu.concatenate %2, %5, %8, %9, %10 in 0 : vector<64x16xf32>, vector<64x16xf32>, vector<64x16xf32>, vector<64x16xf32>, vector<64x16xf32> -> vector<320x16xf32>
    %cst = arith.constant dense<0.000000e+00> : vector<320x6xf32>
    %12 = tpu.matmul %11, %7, %cst {dimension_numbers = #tpu.dot_dimension_numbers<[1], [0], [0], [1], [0, 0, 1, 1], [], []>} : vector<320x16xf32>, vector<16x6xf32>, vector<320x6xf32> -> vector<320x6xf32>
    %13 = vector.extract_strided_slice %12 {offsets = [0, 0], sizes = [16, 6], strides = [1, 1]} : vector<320x6xf32> to vector<16x6xf32>
    %14 = vector.extract_strided_slice %12 {offsets = [16, 0], sizes = [16, 6], strides = [1, 1]} : vector<320x6xf32> to vector<16x6xf32>
    %15 = vector.extract_strided_slice %12 {offsets = [32, 0], sizes = [16, 6], strides = [1, 1]} : vector<320x6xf32> to vector<16x6xf32>
    %16 = vector.extract_strided_slice %12 {offsets = [48, 0], sizes = [16, 6], strides = [1, 1]} : vector<320x6xf32> to vector<16x6xf32>
    %17 = vector.extract_strided_slice %12 {offsets = [64, 0], sizes = [16, 6], strides = [1, 1]} : vector<320x6xf32> to vector<16x6xf32>
    %18 = vector.extract_strided_slice %12 {offsets = [80, 0], sizes = [16, 6], strides = [1, 1]} : vector<320x6xf32> to vector<16x6xf32>
    %19 = vector.extract_strided_slice %12 {offsets = [96, 0], sizes = [16, 6], strides = [1, 1]} : vector<320x6xf32> to vector<16x6xf32>
    %20 = vector.extract_strided_slice %12 {offsets = [112, 0], sizes = [16, 6], strides = [1, 1]} : vector<320x6xf32> to vector<16x6xf32>
    %21 = vector.extract_strided_slice %12 {offsets = [128, 0], sizes = [16, 6], strides = [1, 1]} : vector<320x6xf32> to vector<16x6xf32>
    %22 = vector.extract_strided_slice %12 {offsets = [144, 0], sizes = [16, 6], strides = [1, 1]} : vector<320x6xf32> to vector<16x6xf32>
    %23 = vector.extract_strided_slice %12 {offsets = [160, 0], sizes = [16, 6], strides = [1, 1]} : vector<320x6xf32> to vector<16x6xf32>
    %24 = vector.extract_strided_slice %12 {offsets = [176, 0], sizes = [16, 6], strides = [1, 1]} : vector<320x6xf32> to vector<16x6xf32>
    %25 = vector.extract_strided_slice %12 {offsets = [192, 0], sizes = [16, 6], strides = [1, 1]} : vector<320x6xf32> to vector<16x6xf32>
    %26 = vector.extract_strided_slice %12 {offsets = [208, 0], sizes = [16, 6], strides = [1, 1]} : vector<320x6xf32> to vector<16x6xf32>
    %27 = vector.extract_strided_slice %12 {offsets = [224, 0], sizes = [16, 6], strides = [1, 1]} : vector<320x6xf32> to vector<16x6xf32>
    %28 = vector.extract_strided_slice %12 {offsets = [240, 0], sizes = [16, 6], strides = [1, 1]} : vector<320x6xf32> to vector<16x6xf32>
    %29 = vector.extract_strided_slice %12 {offsets = [256, 0], sizes = [16, 6], strides = [1, 1]} : vector<320x6xf32> to vector<16x6xf32>
    %30 = vector.extract_strided_slice %12 {offsets = [272, 0], sizes = [16, 6], strides = [1, 1]} : vector<320x6xf32> to vector<16x6xf32>
    %31 = vector.extract_strided_slice %12 {offsets = [288, 0], sizes = [16, 6], strides = [1, 1]} : vector<320x6xf32> to vector<16x6xf32>
    %32 = vector.extract_strided_slice %12 {offsets = [304, 0], sizes = [16, 6], strides = [1, 1]} : vector<320x6xf32> to vector<16x6xf32>
    %33 = tpu.concatenate %13, %14, %15, %16, %17, %18, %19, %20, %21, %22, %23, %24, %25, %26, %27, %28 in 1 : vector<16x6xf32>, vector<16x6xf32>, vector<16x6xf32>, vector<16x6xf32>, vector<16x6xf32>, vector<16x6xf32>, vector<16x6xf32>, vector<16x6xf32>, vector<16x6xf32>, vector<16x6xf32>, vector<16x6xf32>, vector<16x6xf32>, vector<16x6xf32>, vector<16x6xf32>, vector<16x6xf32>, vector<16x6xf32> -> vector<16x96xf32>
    %34 = tpu.concatenate %29, %30, %31, %32 in 1 : vector<16x6xf32>, vector<16x6xf32>, vector<16x6xf32>, vector<16x6xf32> -> vector<16x24xf32>
    %35 = tpu.concatenate %33, %34 in 1 : vector<16x96xf32>, vector<16x24xf32> -> vector<16x120xf32>
    %cst_11 = arith.constant dense<0.000000e+00> : vector<6x120xf32>
    %36 = tpu.matmul %6, %35, %cst_11 {dimension_numbers = #tpu.dot_dimension_numbers<[1], [0], [0], [1], [0, 0, 1, 1], [], []>} : vector<6x16xf32>, vector<16x120xf32>, vector<6x120xf32> -> vector<6x120xf32>
    %37 = vector.extract_strided_slice %36 {offsets = [0, 0], sizes = [6, 24], strides = [1, 1]} : vector<6x120xf32> to vector<6x24xf32>
    %38 = vector.extract_strided_slice %36 {offsets = [0, 24], sizes = [6, 24], strides = [1, 1]} : vector<6x120xf32> to vector<6x24xf32>
    %39 = vector.extract_strided_slice %36 {offsets = [0, 48], sizes = [6, 24], strides = [1, 1]} : vector<6x120xf32> to vector<6x24xf32>
    %40 = vector.extract_strided_slice %36 {offsets = [0, 72], sizes = [6, 24], strides = [1, 1]} : vector<6x120xf32> to vector<6x24xf32>
    %41 = vector.extract_strided_slice %36 {offsets = [0, 96], sizes = [6, 24], strides = [1, 1]} : vector<6x120xf32> to vector<6x24xf32>
    %42 = arith.mulf %37, %37 : vector<6x24xf32>
    %43 = arith.mulf %38, %38 : vector<6x24xf32>
    %44 = arith.mulf %37, %38 : vector<6x24xf32>
    %45 = arith.subf %39, %42 : vector<6x24xf32>
    %46 = arith.subf %40, %43 : vector<6x24xf32>
    %47 = arith.subf %41, %44 : vector<6x24xf32>
    %cst_12 = arith.constant 2.000000e+00 : f32
    %48 = vector.broadcast %cst_12 : f32 to vector<6x24xf32>
    %49 = arith.mulf %48, %44 : vector<6x24xf32>
    %cst_13 = arith.constant 9.99999974E-5 : f32
    %50 = vector.broadcast %cst_13 : f32 to vector<6x24xf32>
    %51 = arith.addf %49, %50 : vector<6x24xf32>
    %cst_14 = arith.constant 2.000000e+00 : f32
    %52 = vector.broadcast %cst_14 : f32 to vector<6x24xf32>
    %53 = arith.mulf %52, %47 : vector<6x24xf32>
    %cst_15 = arith.constant 8.99999984E-4 : f32
    %54 = vector.broadcast %cst_15 : f32 to vector<6x24xf32>
    %55 = arith.addf %53, %54 : vector<6x24xf32>
    %56 = arith.mulf %51, %55 : vector<6x24xf32>
    %57 = arith.addf %42, %43 : vector<6x24xf32>
    %cst_16 = arith.constant 9.99999974E-5 : f32
    %58 = vector.broadcast %cst_16 : f32 to vector<6x24xf32>
    %59 = arith.addf %57, %58 : vector<6x24xf32>
    %60 = arith.addf %45, %46 : vector<6x24xf32>
    %cst_17 = arith.constant 8.99999984E-4 : f32
    %61 = vector.broadcast %cst_17 : f32 to vector<6x24xf32>
    %62 = arith.addf %60, %61 : vector<6x24xf32>
    %63 = arith.mulf %59, %62 : vector<6x24xf32>
    %64 = arith.divf %56, %63 : vector<6x24xf32>
    %65 = vector.shape_cast %64 : vector<6x24xf32> to vector<1x6x24xf32>
    %cst_18 = arith.constant dense<0.000000e+00> : vector<1xf32>
    %66 = vector.multi_reduction <add>, %65, %cst_18 [1, 2] : vector<1x6x24xf32> to vector<1xf32>
    %67 = vector.shape_cast %66 : vector<1xf32> to vector<1x1x1xf32>
    %68 = vector.extract %67[0, 0, 0] : f32 from vector<1x1x1xf32>
    %cst_19 = arith.constant 0.0069444445 : f32
    %69 = arith.mulf %68, %cst_19 : f32
    %cst_20 = arith.constant 0.000000e+00 : f32
    %70 = vector.broadcast %cst_20 : f32 to vector<1x1x8x128xf32>
    %71 = vector.broadcast %69 : f32 to vector<1x1x8x128xf32>
    %72 = arith.addf %70, %71 : vector<1x1x8x128xf32>
    %c0_21 = arith.constant 0 : index
    %c0_22 = arith.constant 0 : index
    %c0_23 = arith.constant 0 : index
    %c0_24 = arith.constant 0 : index
    %73 = vector.load %arg6[%c0_21, %c0_22, %c0_23, %c0_24] : memref<1x1x8x128xf32, #tpu.memory_space<vmem>>, vector<1x1x8x128xf32>
    tpu.vector_store %arg6[%c0_21, %c0_22, %c0_23, %c0_24], %72 {strides = array<i32>} : memref<1x1x8x128xf32, #tpu.memory_space<vmem>>, vector<1x1x8x128xf32>,
    return
  }
  func.func @transform_0(%arg0: i32, %arg1: i32) -> (i32, i32, i32, i32) {
    %c0_i32 = arith.constant 0 : i32
    %c0_i32_0 = arith.constant 0 : i32
    %c0_i32_1 = arith.constant 0 : i32
    return %arg0, %arg1, %c0_i32, %c0_i32_0 : i32, i32, i32, i32
  }
  func.func @transform_1(%arg0: i32, %arg1: i32) -> (i32, i32, i32, i32) {
    %c0_i32 = arith.constant 0 : i32
    %c0_i32_0 = arith.constant 0 : i32
    %c0_i32_1 = arith.constant 0 : i32
    return %arg0, %arg1, %c0_i32, %c0_i32_0 : i32, i32, i32, i32
  }
  func.func @transform_2(%arg0: i32, %arg1: i32) -> (i32, i32) {
    %c0_i32 = arith.constant 0 : i32
    %c0_i32_0 = arith.constant 0 : i32
    %c0_i32_1 = arith.constant 0 : i32
    return %c0_i32, %c0_i32_0 : i32, i32
  }
  func.func @transform_3(%arg0: i32, %arg1: i32) -> (i32, i32) {
    %c0_i32 = arith.constant 0 : i32
    %c0_i32_0 = arith.constant 0 : i32
    %c0_i32_1 = arith.constant 0 : i32
    return %c0_i32, %c0_i32_0 : i32, i32
  }
  func.func @transform_4(%arg0: i32, %arg1: i32) -> (i32, i32, i32, i32) {
    %c0_i32 = arith.constant 0 : i32
    %c0_i32_0 = arith.constant 0 : i32
    %c0_i32_1 = arith.constant 0 : i32
    return %arg0, %arg1, %c0_i32, %c0_i32_0 : i32, i32, i32, i32
  }
}

</mosaic_0001>

<bundles_post_ra>
// kernel: tpu_custom_call.1
= control target key start
LH: loop header
LB: loop body
LE: loop exit
PB: predicated region body
PF: predicated region fallthrough
CT: control target
= control target key end

     0   :  { %9 = vsyncpa [#allocation3], 0  ;;  %s2137_s0 = inlined_call_operand.hbm [shape: f32[2,4,16,16], index: 0, kind: input, shape index: {}]   ;;  %s2138_s1 = inlined_call_operand.hbm [shape: f32[2,4,16,16], index: 1, kind: input, shape index: {}]   ;;  %s2139_s2 = inlined_call_operand.vmem [shape: f32[6,16], index: 2, kind: input, shape index: {}]   ;;  %s2140_s3 = inlined_call_operand.vmem [shape: f32[16,6], index: 3, kind: input, shape index: {}]   ;;  %s2141_s4 = inlined_call_operand.hbm [shape: f32[2,1,8,128], index: 4, kind: output, shape index: {}]  }
   0x1   :  { %11 = vsyncpa [#allocation3 + $0x1], 0 }
   0x2   :  { %12 = vsyncpa [#allocation6], 0 }
   0x3   :  { %14 = vsyncpa [#allocation6 + $0x1], 0 }
   0x4   :  { %15 = vsyncpa [#allocation4], 0 }
   0x5   :  { %17 = vsyncpa [#allocation4 + $0x1], 0  ;;  %s1747_s15 = smov 0   ;;  %s1749_s16 = smov 0  }
   0x6   :  { %s1751_s17 = smov 0   ;;  %s1753_s18 = smov 0  }
   0x7   :  { %s1755_s19 = smov 0   ;;  %s1757_s20 = smov 0  }
   0x8 LB: > { %s1171_s21 = sadd.s32 4294967295, %s1693_s20   ;;  %s1172_s22 = sadd.s32 4294967294, %s1693_s20   ;;  %s1693_s20 = sphi %s1757_s20, %s23_s20   ;;  %s1689_s19 = sphi %s1755_s19, %s2161_s19   ;;  %s1685_s18 = sphi %s1753_s18, %s2160_s18   ;;  %s1681_s17 = sphi %s1751_s17, %s2159_s17   ;;  %s1677_s16 = sphi %s1749_s16, %s2158_s16   ;;  %s1673_s15 = sphi %s1747_s15, %s2157_s15  }
   0x9   : > { %s35_s23 = sadd.s32 1, %s1689_s19  ;;  %s44_s24 = sadd.s32 1, %s1681_s17 }
   0xa   : > { %p37_p0 = scmp.ge.s32.totalorder %s35_s23, 2  ;;  %p51_p1 = scmp.ne.s32.totalorder %s1681_s17, %s1677_s16 }
   0xb   : > { %p52_p2 = scmp.eq.s32.totalorder %s1693_s20, 0  ;;  %p57_p3 = scmp.ne.s32.totalorder %s1677_s16, %s1673_s15 }
   0xc   : > { %s2163_s23 = smov (%p37_p0, %s35_s23), 0  ;;  %p58_p5 = scmp.eq.s32.totalorder %s1171_s21, 0 }
   0xd   : > { %p1788_p4 = por %p52_p2, %p51_p1  ;;  %s39_s26 = ssub.s32 %s1689_s19, %s2163_s23 }
   0xe   : > { %p153_p6 = scmp.eq.s32.totalorder %s1171_s21, 1  ;;  %p42_p7 = scmp.eq.s32.totalorder %s39_s26, 0 }
   0xf   : > { %p1794_p8 = por %p58_p5, %p57_p3  ;;  %p159_p10 = scmp.eq.s32.totalorder %s1172_s22, 1 }
  0x10   : > { %p1798_p9 = por %p153_p6, %p51_p1  ;;  %p1376_p13 = scmp.lt.s32.totalorder %s1693_s20, 2 }
  0x11   : > { %s2146_s27 = scalar_select %p1794_p8, 1, 0 }
  0x12   : > { %s2147_s28 = scalar_select %p1798_p9, 1, 0 }
  0x13   : > { %s1803_s29 = scalar_select %p42_p7, %s1681_s17, %s44_s24  }
  0x14   : > { %p1805_p11 = por %p159_p10, %p57_p3  ;;  %s1812_s5 = sand.u32 1, %s1681_s17  }
  0x15   : > { %s1175_s6 = sshll.u32 %s1812_s5, 6  ;;  %s1230_s7 = sshll.u32 %s1689_s19, 10 }
  0x16   : > { %s2148_s30 = scalar_select %p1805_p11, 1, 0 }
  0x17   : > { %s1821_s10 = scalar_lea.hbm %s2137_s0, %s1230_s7  ;;  %s189_s11 = scalar_lea.vmem [#allocation2], %s1175_s6 }
  0x18   : > { %s199_s12 = sshll.u32 %s189_s11, 4  ;;  %p1829_p0 = pnand %p1376_p13, %p1788_p4  ;;  %s1825_s12 = int_to_ptr.vmem [resolvable:$true] %s199_s12 }
  0x19   : > { %s186_s14 = scalar_lea.sflag [#allocation3], %s1812_s5  ;;  %s1547_s21 = scalar_lea.hbm %s1821_s10, 1024 }
  0x1a   : > { %p1548_p2 = scmp.ne.s32.totalorder %s1821_s10, %s1547_s21  ;;  %p1549_p3 = pneg %p1829_p0 }
  0x1b   : > { %s1552_s25 = scalar_lea.hbm %s2137_s0, 2048  ;;  %p1553_p4 = scmp.lt.u32.totalorder %s1821_s10, %s2137_s0 }
  0x1c   : > { %p1550_p5 = pnand %p1549_p3, %p1548_p2  ;;  %p1554_p7 = scmp.lt.u32.totalorder %s1552_s25, %s1547_s21 }
  0x1d   : > { %p1556_p13 = scmp.lt.u32.totalorder %s1547_s21, %s1821_s10 }
  0x1e   : > { %p1551_p6 = pneg %p1550_p5  ;;  %p1555_p10 = por %p1554_p7, %p1553_p4 }
  0x20   : > { %p1557_p12 = por %p1556_p13, %p1555_p10 }
  0x22   : > { %p1558_p1 = pnand %p1557_p12, %p1551_p6 }
  0x24   : > { %1561 = shalt.err (!%p1558_p1)
}
  0x25   : > { %s1562_s9 = scalar_lea.vmem %s1825_s12, 1024  ;;  %s1695_s11 = smov [#allocation2]  }
  0x26   : > { %p1563_p2 = scmp.ne.s32.totalorder %s1825_s12, %s1562_s9  ;;  %s1567_s22 = sshll.u32 %s1695_s11, 4  ;;  %s1568_s22 = int_to_ptr.vmem [resolvable:$false] %s1567_s22 }
  0x27   : > { %s1569_s24 = scalar_lea.vmem %s1568_s22, 2048  ;;  %p1570_p9 = scmp.lt.s32.totalorder %s1825_s12, %s1568_s22 }
  0x28   : > { %p1565_p5 = pnand %p1563_p2, %p1549_p3  ;;  %p1571_p4 = scmp.lt.s32.totalorder %s1569_s24, %s1562_s9 }
  0x2a   : > { %p1566_p11 = pneg %p1565_p5  ;;  %p1572_p7 = por %p1571_p4, %p1570_p9 }
  0x2c   : > { %p1573_p10 = pnand %p1572_p7, %p1566_p11 }
  0x2e   : > { %1576 = shalt.err (!%p1573_p10)
}
  0x2f   : > { %s2143_s21 = smov 128   ;;  %s1697_s25 = smov 8  }
  0x30   : > { %1368 = dma.hbm_to_vmem [thread:$0]  (!%p1829_p0), %s1821_s10, 1024, %s1825_s12, %s186_s14, %s2143_s21, %s2143_s21, %s1697_s25  }
  0x31   : > { %p231_p9 = scmp.lt.s32.totalorder %s1693_s20, 3  ;;  %s1871_s9 = scalar_lea.hbm %s2138_s1, %s1230_s7 }
  0x32   : > { %p2150_p11 = scmp.ge.s32.totalorder %s1693_s20, 1  ;;  %s213_s22 = scalar_lea.vmem [#allocation5], %s1175_s6 }
  0x33   : > { %s223_s24 = sshll.u32 %s213_s22, 4  ;;  %s210_s10 = scalar_lea.sflag [#allocation6], %s1812_s5  ;;  %s1881_s24 = int_to_ptr.vmem [resolvable:$true] %s223_s24 }
  0x34   : > { %p1875_p12 = pnand %p2150_p11, %p231_p9  ;;  %s1577_s12 = scalar_lea.hbm %s1871_s9, 1024 }
  0x35   : > { %p1578_p1 = scmp.ne.s32.totalorder %s1871_s9, %s1577_s12  ;;  %s1582_s26 = scalar_lea.hbm %s2138_s1, 2048 }
  0x36   : > { %p1583_p2 = scmp.lt.u32.totalorder %s1871_s9, %s2138_s1  ;;  %p1584_p5 = scmp.lt.u32.totalorder %s1582_s26, %s1577_s12 }
  0x37   : > { %p1580_p6 = pnand %p1578_p1, %p1549_p3  ;;  %p1586_p7 = scmp.lt.u32.totalorder %s1577_s12, %s1871_s9 }
  0x38   : > { %p1585_p4 = por %p1584_p5, %p1583_p2 }
  0x39   : > { %p1581_p13 = pneg %p1580_p6 }
  0x3a   : > { %p1587_p10 = por %p1586_p7, %p1585_p4 }
  0x3c   : > { %p1588_p9 = pnand %p1587_p10, %p1581_p13 }
  0x3e   : > { %1591 = shalt.err (!%p1588_p9)
}
  0x3f   : > { %s1592_s6 = scalar_lea.vmem %s1881_s24, 1024  ;;  %s1698_s22 = smov [#allocation5]  }
  0x40   : > { %p1593_p11 = scmp.ne.s32.totalorder %s1881_s24, %s1592_s6  ;;  %s1597_s7 = sshll.u32 %s1698_s22, 4  ;;  %s1598_s7 = int_to_ptr.vmem [resolvable:$false] %s1597_s7 }
  0x41   : > { %s1599_s21 = scalar_lea.vmem %s1598_s7, 2048  ;;  %p1600_p8 = scmp.lt.s32.totalorder %s1881_s24, %s1598_s7 }
  0x42   : > { %p1595_p1 = pnand %p1593_p11, %p1549_p3  ;;  %p1601_p2 = scmp.lt.s32.totalorder %s1599_s21, %s1592_s6 }
  0x44   : > { %p1596_p6 = pneg %p1595_p1  ;;  %p1602_p5 = por %p1601_p2, %p1600_p8 }
  0x46   : > { %p1603_p4 = pnand %p1602_p5, %p1596_p6 }
  0x48   : > { %1606 = shalt.err (!%p1603_p4)
}
  0x49   : > { %s2152_s12 = smov 128   ;;  %235 = sbr.rel (%p1875_p12) target bundleno = 1382 (0x566), region = 36 }
  0x4a   : > { %1371 = dma.hbm_to_vmem [thread:$0]  (!%p1829_p0), %s1871_s9, 1024, %s1881_s24, %s210_s10, %s2152_s12, %s2152_s12, %s1697_s25  }
  0x4b   : > { %s1915_s14 = sand.u32 (!%p1875_p12), 1, %s1677_s16   ;;  %p2153_p8 = scmp.ne.s32.totalorder (!%p1875_p12), %s2146_s27, 0 }
  0x4c   : > { %s1182_s26 = sshll.u32 (!%p1875_p12), %s1915_s14, 6  ;;  %s238_s8 = scalar_lea.sflag (!%p1875_p12), [#allocation3], %s1915_s14 }
  0x4d   : > { %s1919_s13 = scalar_lea.vmem (!%p1875_p12), [#allocation2], %s1182_s26 }
  0x50   : > { %1660 = dma.done.wait (%p2153_p8), %s238_s8, 1024  }
  0x51   : > { %1662 = vsyncadd (%p2153_p8), %s238_s8, 4294966272  ;;  %s247_s5 = scalar_lea.sflag [#allocation6], %s1915_s14  ;;  %s1926_s25 = scalar_lea.vmem [#allocation5], %s1182_s26 }
  0x52   : > { %1664 = dma.done.wait (%p2153_p8), %s247_s5, 1024  }
  0x53   : > { %1666 = vsyncadd (%p2153_p8), %s247_s5, 4294966272  ;;  %v299_v0 = vld [vmem:[%s2140_s3] sm:$0xff]  ;;  %v300_v1 = vld [vmem:[%s2140_s3 + $0x8] sm:$0xff]  ;;  %vm325_vm0 = vcmask 130048   ;;  %s1699_s27 = smov 6   ;;  %s1700_s6 = smov 12  }
  0x54   : > { %v1939_v2 = vld [vmem:[%s1919_s13 + $0x30] sm:$0xff]  ;;  %v1348_v3 = vpack.c.bf16 %v300_v1, %v299_v0  ;;  %v1944_v5 = vld [vmem:[%s1919_s13 + $0x38] sm:$0xff]  ;;  %v290_v6 = vld [vmem:[%s1926_s25] sm:$0xff]  ;;  %s1701_s22 = smov 18   ;;  %s1702_s7 = smov 24   ;;  %vm831_vm1 = vcmask 48128  }
  0x55   : > { %v307_v4 = vmul.f32 %v1939_v2, %v1939_v2  ;;  %v308_v7 = vmul.f32 %v1944_v5, %v1944_v5  ;;  %v282_v8 = vld [vmem:[%s1919_s13] sm:$0xff]  ;;  %v309_v9 = vmul.f32 %v290_v6, %v290_v6  ;;  %v291_v10 = vld [vmem:[%s1926_s25 + $0x8] sm:$0xff]  ;;  %v292_v11 = vld [vmem:[%s1926_s25 + $0x10] sm:$0xff]  ;;  %s1703_s21 = smov 36   ;;  %s1704_s12 = smov 72   ;;  %vm834_vm2 = vcmask 97280  }
  0x56   : > { %1355 = vmatprep.subr.bf16.mxu1 %v1348_v3  ;;  %1349 = vmatprep.subr.bf16.mxu0 %v1348_v3  ;;  %v283_v12 = vld [vmem:[%s1919_s13 + $0x8] sm:$0xff]  ;;  %v284_v13 = vld [vmem:[%s1919_s13 + $0x10] sm:$0xff]  ;;  %v310_v14 = vmul.f32 %v291_v10, %v291_v10  ;;  %v311_v15 = vmul.f32 %v292_v11, %v292_v11  ;;  %v293_v16 = vld [vmem:[%s1926_s25 + $0x18] sm:$0xff]  ;;  %v317_v29 = vmul.f32 %v290_v6, %v282_v8  ;;  %s1705_s26 = smov 30   ;;  %s1706_s8 = smov 42   ;;  %vm1715_vm3 = vmmov 0  }
  0x57   : > { %1314 = vmatprep.mubr.msk.f32.mxu1 %vm325_vm0, %v307_v4  ;;  %1356 = vmatpush3.bf16.msra.mxu1 %v1348_v3  ;;  %v294_v17 = vld [vmem:[%s1926_s25 + $0x20] sm:$0xff]  ;;  %v285_v18 = vld [vmem:[%s1919_s13 + $0x18] sm:$0xff]  ;;  %v312_v20 = vmul.f32 %v293_v16, %v293_v16  ;;  %v295_v22 = vld [vmem:[%s1926_s25 + $0x28] sm:$0xff]  ;;  %v318_v30 = vmul.f32 %v291_v10, %v283_v12  ;;  %v319_v31 = vmul.f32 %v292_v11, %v284_v13  ;;  %s1708_s5 = smov 66   ;;  %s1710_s9 = smov 54   ;;  %vm837_vm4 = vcmask 146432  }
  0x58   : > { %1351 = vmatpush3.bf16.msra.mxu0 %v1348_v3  ;;  %1281 = vmatprep.mubr.msk.f32.mxu0 %vm325_vm0, %v282_v8  ;;  %v286_v19 = vld [vmem:[%s1919_s13 + $0x20] sm:$0xff]  ;;  %v313_v21 = vmul.f32 %v294_v17, %v294_v17  ;;  %v296_v23 = vld [vmem:[%s1926_s25 + $0x30] sm:$0xff]  ;;  %v287_v24 = vld [vmem:[%s1919_s13 + $0x28] sm:$0xff]  ;;  %v314_v25 = vmul.f32 %v295_v22, %v295_v22  ;;  %v320_v32 = vmul.f32 %v293_v16, %v285_v18  ;;  %s1707_s13 = smov 48   ;;  %s1711_s11 = smov 84   ;;  %vm840_vm5 = vcmask 195584  }
  0x59   : > { %v315_v26 = vmul.f32 %v296_v23, %v296_v23  ;;  %v297_v27 = vld [vmem:[%s1926_s25 + $0x38] sm:$0xff]  ;;  %v321_v33 = vmul.f32 %v294_v17, %v286_v19  ;;  %v322_v34 = vmul.f32 %v295_v22, %v287_v24  ;;  %v323_v35 = vmul.f32 %v296_v23, %v1939_v2  ;;  %s1709_s25 = smov 60   ;;  %s1712_s24 = smov 78  }
  0x5a   : > { %1315 = vmatmul.mubr.msk.f32.vlgmr.msra.gmra.mrb[0].mxu1 %vm325_vm0, %v308_v7  ;;  %v316_v28 = vmul.f32 %v297_v27, %v297_v27  ;;  %v301_v36 = vmul.f32 %v282_v8, %v282_v8  ;;  %v324_v37 = vmul.f32 %v297_v27, %v1944_v5  ;;  %v302_v38 = vmul.f32 %v283_v12, %v283_v12  ;;  %s1713_s10 = smov 90   ;;  %p2154_p3 = scmp.ne.s32.totalorder %s2147_s28, 0 }
  0x5b   : > { %1317 = vmatprep.mubr.msk.f32.mxu1 %vm325_vm0, %v309_v9  ;;  %1282 = vmatmul.mubr.msk.f32.vlgmr.msra.gmra.mrb[0].mxu0 %vm325_vm0, %v283_v12  ;;  %v303_v39 = vmul.f32 %v284_v13, %v284_v13  ;;  %v304_v40 = vmul.f32 %v285_v18, %v285_v18  ;;  %v305_v41 = vmul.f32 %v286_v19, %v286_v19  ;;  %vm843_vm6 = vcmask 244736  }
  0x5c   : > { %1284 = vmatprep.mubr.msk.f32.mxu0 %vm325_vm0, %v284_v13  ;;  %v306_v42 = vmul.f32 %v287_v24, %v287_v24  ;;  %vm846_vm7 = vcmask 293888   ;;  %vm849_vm8 = vcmask 343040   ;;  %vm852_vm9 = vcmask 392192  }
  0x5d   : > { %vm855_vm10 = vcmask 441344   ;;  %vm858_vm11 = vcmask 490496   ;;  %vm861_vm12 = vcmask 539648   ;;  %vm864_vm13 = vcmask 588800  }
  0x5e   : > { %1318 = vmatmul.mubr.msk.f32.gmra.mrb[2].mxu1 %vm325_vm0, %v310_v14  ;;  %vm867_vm14 = vcmask 637952   ;;  %vm870_vm15 = vcmask 687104  }
  0x5f   : > { %1320 = vmatprep.mubr.msk.f32.mxu1 %vm325_vm0, %v311_v15  ;;  %1285 = vmatmul.mubr.msk.f32.gmra.mrb[2].mxu0 %vm325_vm0, %v285_v18 }
  0x60   : > { %1287 = vmatprep.mubr.msk.f32.mxu0 %vm325_vm0, %v286_v19 }
  0x62   : > { %1321 = vmatmul.mubr.msk.f32.gmra.mrb[4].mxu1 %vm325_vm0, %v312_v20 }
  0x63   : > { %1323 = vmatprep.mubr.msk.f32.mxu1 %vm325_vm0, %v313_v21  ;;  %1288 = vmatmul.mubr.msk.f32.gmra.mrb[4].mxu0 %vm325_vm0, %v287_v24 }
  0x64   : > { %1290 = vmatprep.mubr.msk.f32.mxu0 %vm325_vm0, %v1939_v2 }
  0x66   : > { %1324 = vmatmul.mubr.msk.f32.gmra.mrb[6].mxu1 %vm325_vm0, %v314_v25 }
  0x67   : > { %1326 = vmatprep.mubr.msk.f32.mxu1 %vm325_vm0, %v315_v26  ;;  %1291 = vmatmul.mubr.msk.f32.gmra.mrb[6].mxu0 %vm325_vm0, %v1944_v5 }
  0x68   : > { %1293 = vmatprep.mubr.msk.f32.mxu0 %vm325_vm0, %v290_v6 }
  0x6a   : > { %1327 = vmatmul.mubr.msk.f32.gmra.mrb[8].mxu1 %vm325_vm0, %v316_v28 }
  0x6b   : > { %1329 = vmatprep.mubr.msk.f32.mxu1 %vm325_vm0, %v317_v29  ;;  %1294 = vmatmul.mubr.msk.f32.gmra.mrb[8].mxu0 %vm325_vm0, %v291_v10 }
  0x6c   : > { %1296 = vmatprep.mubr.msk.f32.mxu0 %vm325_vm0, %v292_v11 }
  0x6e   : > { %1330 = vmatmul.mubr.msk.f32.gmra.mrb[10].mxu1 %vm325_vm0, %v318_v30 }
  0x6f   : > { %1332 = vmatprep.mubr.msk.f32.mxu1 %vm325_vm0, %v319_v31  ;;  %1297 = vmatmul.mubr.msk.f32.gmra.mrb[10].mxu0 %vm325_vm0, %v293_v16 }
  0x70   : > { %1299 = vmatprep.mubr.msk.f32.mxu0 %vm325_vm0, %v294_v17 }
  0x72   : > { %1333 = vmatmul.mubr.msk.f32.gmra.mrb[12].mxu1 %vm325_vm0, %v320_v32 }
  0x73   : > { %1335 = vmatprep.mubr.msk.f32.mxu1 %vm325_vm0, %v321_v33  ;;  %1300 = vmatmul.mubr.msk.f32.gmra.mrb[12].mxu0 %vm325_vm0, %v295_v22 }
  0x74   : > { %1302 = vmatprep.mubr.msk.f32.mxu0 %vm325_vm0, %v296_v23 }
  0x76   : > { %1336 = vmatmul.mubr.msk.f32.gmra.mrb[14].mxu1 %vm325_vm0, %v322_v34 }
  0x77   : > { %1338 = vmatprep.mubr.msk.f32.mxu1 %vm325_vm0, %v323_v35  ;;  %1303 = vmatmul.mubr.msk.f32.gmra.mrb[14].mxu0 %vm325_vm0, %v297_v27 }
  0x78   : > { %1305 = vmatprep.mubr.msk.f32.mxu0 %vm325_vm0, %v301_v36 }
  0x7a   : > { %1339 = vmatmul.mubr.msk.f32.gmra.mrb[16].mxu1 %vm325_vm0, %v324_v37 }
  0x7b   : > { %1306 = vmatmul.mubr.msk.f32.gmra.mrb[16].mxu0 %vm325_vm0, %v302_v38 }
  0x7c   : > { %1308 = vmatprep.mubr.msk.f32.mxu0 %vm325_vm0, %v303_v39 }
  0x7f   : > { %1309 = vmatmul.mubr.msk.f32.gmra.mrb[18].mxu0 %vm325_vm0, %v304_v40 }
  0x80   : > { %1311 = vmatprep.mubr.msk.f32.mxu0 %vm325_vm0, %v305_v41  ;;  %v1714_v41 = vmov 0.0|0.0  }
  0x81   : > { %1352 = vmatprep.subr.bf16.mxu1 %v1714_v41 }
  0x83   : > { %1312 = vmatmul.mubr.msk.f32.gmra.mrb[20].mxu0 %vm325_vm0, %v306_v42 }
 0x12d   : > { %v2006_v43 = vpop.f32.mrb[0].mxu1 }
 0x12e   : > { %v2008_v44 = vpop.f32.mrb[1].mxu1  ;;  %v2010_v45 = vpop.f32.mrb[0].mxu0 }
 0x12f   : > { %v1500_v46 = vpack.i.bf16 %v2006_v43, %v2008_v44  ;;  %v2014_v47 = vpop.f32.mrb[1].mxu0  ;;  %v1716_v44 = vmov 0.0  }
 0x130   : > { %1345 = vmatprep.mubr.msk.f32.mxu1 %vm1715_vm3, %v1716_v44 }
 0x131   : > { %v2016_v48 = vpop.f32.mrb[2].mxu1 }
 0x132   : > { %v2018_v49 = vpop.f32.mrb[3].mxu1  ;;  %v1286_v50 = vpop.f32.mrb[2].mxu0 }
 0x133   : > { %v1505_v51 = vpack.i.bf16 %v2016_v48, %v2018_v49  ;;  %v522_v52 = vpop.f32.mrb[3].mxu0 }
 0x134   : > { %v1465_v53 = vpack.i.bf16 %v1286_v50, %v522_v52 }
 0x135   : > { %v2022_v54 = vpop.f32.mrb[4].mxu1 }
 0x136   : > { %v2024_v55 = vpop.f32.mrb[5].mxu1  ;;  %v1289_v56 = vpop.f32.mrb[4].mxu0 }
 0x137   : > { %v1520_v57 = vpack.i.bf16 %v2022_v54, %v2024_v55  ;;  %v532_v58 = vpop.f32.mrb[5].mxu0 }
 0x138   : > { %v1470_v59 = vpack.i.bf16 %v1289_v56, %v532_v58 }
 0x139   : > { %v2028_v60 = vpop.f32.mrb[6].mxu1 }
 0x13a   : > { %v2030_v61 = vpop.f32.mrb[7].mxu1  ;;  %v1292_v62 = vpop.f32.mrb[6].mxu0 }
 0x13b   : > { %v1530_v63 = vpack.i.bf16 %v2028_v60, %v2030_v61  ;;  %v542_v0 = vpop.f32.mrb[7].mxu0 }
 0x13c   : > { %v1475_v1 = vpack.i.bf16 %v1292_v62, %v542_v0 }
 0x13d   : > { %v2034_v2 = vpop.f32.mrb[8].mxu1 }
 0x13e   : > { %v2036_v3 = vpop.f32.mrb[9].mxu1  ;;  %v1295_v4 = vpop.f32.mrb[8].mxu0 }
 0x13f   : > { %v1535_v5 = vpack.i.bf16 %v2034_v2, %v2036_v3  ;;  %v552_v6 = vpop.f32.mrb[9].mxu0 }
 0x140   : > { %v1480_v7 = vpack.i.bf16 %v1295_v4, %v552_v6 }
 0x141   : > { %v2040_v8 = vpop.f32.mrb[10].mxu1 }
 0x142   : > { %v2042_v9 = vpop.f32.mrb[11].mxu1  ;;  %v1298_v10 = vpop.f32.mrb[10].mxu0 }
 0x143   : > { %v562_v11 = vpop.f32.mrb[11].mxu0 }
 0x144   : > { %v1485_v12 = vpack.i.bf16 %v1298_v10, %v562_v11 }
 0x145   : > { %v1334_v13 = vpop.f32.mrb[12].mxu1 }
 0x146   : > { %v682_v14 = vpop.f32.mrb[13].mxu1  ;;  %v1301_v15 = vpop.f32.mrb[12].mxu0 }
 0x147   : > { %v1450_v16 = vpack.i.bf16 %v1334_v13, %v682_v14  ;;  %v572_v17 = vpop.f32.mrb[13].mxu0 }
 0x148   : > { %v1490_v18 = vpack.i.bf16 %v1301_v15, %v572_v17 }
 0x149   : > { %1451 = vrot.lane.b32.xlu0 %v1450_v16, %s1699_s27  ;;  %v1337_v19 = vpop.f32.mrb[14].mxu1 }
 0x14a   : > { %v692_v20 = vpop.f32.mrb[15].mxu1  ;;  %v1304_v21 = vpop.f32.mrb[14].mxu0 }
 0x14b   : > { %v1455_v22 = vpack.i.bf16 %v1337_v19, %v692_v20  ;;  %v582_v23 = vpop.f32.mrb[15].mxu0 }
 0x14c   : > { %v1495_v24 = vpack.i.bf16 %v1304_v21, %v582_v23 }
 0x14d   : > { %1456 = vrot.lane.b32.xlu0 %v1455_v22, %s1700_s6  ;;  %v1340_v25 = vpop.f32.mrb[16].mxu1 }
 0x14e   : > { %v702_v26 = vpop.f32.mrb[17].mxu1  ;;  %v1307_v27 = vpop.f32.mrb[16].mxu0 }
 0x14f   : > { %v1460_v28 = vpack.i.bf16 %v1340_v25, %v702_v26  ;;  %v592_v29 = vpop.f32.mrb[17].mxu0 }
 0x150   : > { %v1510_v30 = vpack.i.bf16 %v1307_v27, %v592_v29 }
 0x151   : > { %1471 = vrot.lane.b32.xlu0 %v1470_v59, %s1700_s6  ;;  %1461 = vrot.lane.b32.xlu1 %v1460_v28, %s1701_s22 }
 0x152   : > { %v1310_v31 = vpop.f32.mrb[18].mxu0 }
 0x153   : > { %v602_v32 = vpop.f32.mrb[19].mxu0 }
 0x154   : > { %v1515_v33 = vpack.i.bf16 %v1310_v31, %v602_v32 }
 0x155   : > { %1481 = vrot.lane.b32.xlu0 %v1480_v7, %s1702_s7  ;;  %1466 = vrot.lane.b32.xlu1 %v1465_v53, %s1699_s27  ;;  %s1717_s27 = smov 96   ;;  %s1718_s7 = smov 104  }
 0x156   : > { %v1313_v34 = vpop.f32.mrb[20].mxu0 }
 0x157   : > { %v612_v35 = vpop.f32.mrb[21].mxu0 }
 0x158   : > { %v1525_v36 = vpack.i.bf16 %v1313_v34, %v612_v35 }
 0x159   : > { %1491 = vrot.lane.b32.xlu0 %v1490_v18, %s1703_s21  ;;  %1476 = vrot.lane.b32.xlu1 %v1475_v1, %s1701_s22  ;;  %s1719_s21 = smov 32  }
 0x15d   : > { %1506 = vrot.lane.b32.xlu0 %v1505_v51, %s1704_s12  ;;  %1486 = vrot.lane.b32.xlu1 %v1485_v12, %s1705_s26  ;;  %s1720_s12 = smov 80   ;;  %s1184_s26 = sshll.u32 %s1915_s14, 3 }
 0x161   : > { %1496 = vrot.lane.b32.xlu1 %v1495_v24, %s1706_s8  ;;  %1511 = vrot.lane.b32.xlu0 %v1510_v30, %s1707_s13  ;;  %s279_s8 = scalar_lea.vmem [#allocation7], %s1184_s26 }
 0x165   : > { %1501 = vrot.lane.b32.xlu1 %v1500_v46, %s1708_s5  ;;  %1526 = vrot.lane.b32.xlu0 %v1525_v36, %s1709_s25  ;;  %s1227_s5 = sshll.u32 %s1685_s18, 7  ;;  %s1721_s18 = smov [#allocation7]  }
 0x166   : > { %s1611_s22 = sshll.u32 %s1721_s18, 4  ;;  %s1612_s22 = int_to_ptr.vmem [resolvable:$false] %s1611_s22 }
 0x169   : > { %1516 = vrot.lane.b32.xlu1 %v1515_v33, %s1710_s9  ;;  %1531 = vrot.lane.b32.xlu0 %v1530_v63, %s1711_s11 }
 0x16d   : > { %1521 = vrot.lane.b32.xlu1 %v1520_v57, %s1712_s24 }
 0x171   : > { %1536 = vrot.lane.b32.xlu1 %v1535_v5, %s1713_s10  ;;  %s2088_s10 = scalar_lea.hbm %s2141_s4, %s1227_s5 }
 0x1bb   : > { %v1452_v37 = vpop.permute.xlu0 %1451 }
 0x1bc   : > { %v1454_v39 = vunpack.i.h.bf16 %v1452_v37  ;;  %v1453_v40 = vunpack.i.l.bf16 %v1452_v37 }
 0x1be   : > { %v901_v48 = vsel %vm831_vm1, %v2040_v8, %v1454_v39  ;;  %v900_v49 = vsel %vm831_vm1, %v2042_v9, %v1453_v40 }
 0x1bf   : > { %v1457_v38 = vpop.permute.xlu0 %1456 }
 0x1c0   : > { %v1459_v42 = vunpack.i.h.bf16 %v1457_v38  ;;  %v1458_v43 = vunpack.i.l.bf16 %v1457_v38 }
 0x1c2   : > { %v903_v52 = vsel %vm834_vm2, %v901_v48, %v1459_v42  ;;  %v902_v53 = vsel %vm834_vm2, %v900_v49, %v1458_v43 }
 0x1c3   : > { %v1462_v46 = vpop.permute.xlu1 %1461  ;;  %v1472_v54 = vpop.permute.xlu0 %1471 }
 0x1c4   : > { %v1464_v50 = vunpack.i.h.bf16 %v1462_v46  ;;  %v1463_v51 = vunpack.i.l.bf16 %v1462_v46  ;;  %v1474_v57 = vunpack.i.h.bf16 %v1472_v54  ;;  %v1473_v58 = vunpack.i.l.bf16 %v1472_v54 }
 0x1c6   : > { %v904_v55 = vsel %vm837_vm4, %v902_v53, %v1463_v51  ;;  %v905_v56 = vsel %vm837_vm4, %v903_v52, %v1464_v50 }
 0x1c7   : > { %v1467_v59 = vpop.permute.xlu1 %1466  ;;  %v1540_v60 = vpack.i.bf16 %v905_v56, %v904_v55  ;;  %v1482_v8 = vpop.permute.xlu0 %1481 }
 0x1c8   : > { %v1469_v61 = vunpack.i.h.bf16 %v1467_v59  ;;  %v1468_v62 = vunpack.i.l.bf16 %v1467_v59  ;;  %v1483_v13 = vunpack.i.l.bf16 %v1482_v8 }
 0x1c9   : > { %1541 = vrot.lane.b32.xlu0 %v1540_v60, %s1717_s27 }
 0x1ca   : > { %v833_v63 = vsel %vm831_vm1, %v2010_v45, %v1469_v61  ;;  %v832_v0 = vsel %vm831_vm1, %v2014_v47, %v1468_v62  ;;  %v1484_v45 = vunpack.i.h.bf16 %v1482_v8  ;;  %vm873_vm1 = vcmask 736256  }
 0x1cb   : > { %v1477_v1 = vpop.permute.xlu1 %1476  ;;  %v835_v2 = vsel %vm834_vm2, %v832_v0, %v1473_v58  ;;  %v836_v3 = vsel %vm834_vm2, %v833_v63, %v1474_v57  ;;  %v1492_v10 = vpop.permute.xlu0 %1491  ;;  %vm914_vm2 = vcmask 785408  }
 0x1cc   : > { %v1479_v4 = vunpack.i.h.bf16 %v1477_v1  ;;  %v1478_v5 = vunpack.i.l.bf16 %v1477_v1  ;;  %v1494_v16 = vunpack.i.h.bf16 %v1492_v10  ;;  %v1493_v17 = vunpack.i.l.bf16 %v1492_v10  ;;  %v298_v10 = vld [vmem:[%s2139_s2] sm:$0x3f] }
 0x1ce   : > { %v838_v6 = vsel %vm837_vm4, %v835_v2, %v1478_v5  ;;  %v839_v7 = vsel %vm837_vm4, %v836_v3, %v1479_v4 }
 0x1cf   : > { %v1487_v9 = vpop.permute.xlu1 %1486  ;;  %v1507_v12 = vpop.permute.xlu0 %1506  ;;  %v841_v18 = vsel %vm840_vm5, %v838_v6, %v1483_v13  ;;  %v842_v19 = vsel %vm840_vm5, %v839_v7, %v1484_v45 }
 0x1d0   : > { %v1489_v47 = vunpack.i.h.bf16 %v1487_v9  ;;  %v1488_v15 = vunpack.i.l.bf16 %v1487_v9  ;;  %v1509_v50 = vunpack.i.h.bf16 %v1507_v12  ;;  %v1508_v51 = vunpack.i.l.bf16 %v1507_v12 }
 0x1d2   : > { %v844_v20 = vsel %vm843_vm6, %v841_v18, %v1488_v15  ;;  %v845_v21 = vsel %vm843_vm6, %v842_v19, %v1489_v47 }
 0x1d3   : > { %v1497_v11 = vpop.permute.xlu1 %1496  ;;  %v1512_v24 = vpop.permute.xlu0 %1511  ;;  %v847_v26 = vsel %vm846_vm7, %v844_v20, %v1493_v17  ;;  %v848_v27 = vsel %vm846_vm7, %v845_v21, %v1494_v16 }
 0x1d4   : > { %v1499_v22 = vunpack.i.h.bf16 %v1497_v11  ;;  %v1498_v23 = vunpack.i.l.bf16 %v1497_v11  ;;  %v1514_v28 = vunpack.i.h.bf16 %v1512_v24  ;;  %v1513_v29 = vunpack.i.l.bf16 %v1512_v24 }
 0x1d6   : > { %v850_v30 = vsel %vm849_vm8, %v847_v26, %v1498_v23  ;;  %v851_v31 = vsel %vm849_vm8, %v848_v27, %v1499_v22 }
 0x1d7   : > { %v1502_v14 = vpop.permute.xlu1 %1501  ;;  %v1527_v34 = vpop.permute.xlu0 %1526  ;;  %v854_v35 = vsel %vm852_vm9, %v851_v31, %v1514_v28  ;;  %v853_v36 = vsel %vm852_vm9, %v850_v30, %v1513_v29 }
 0x1d8   : > { %v1529_v37 = vunpack.i.h.bf16 %v1527_v34  ;;  %v1528_v38 = vunpack.i.l.bf16 %v1527_v34  ;;  %v1504_v44 = vunpack.i.h.bf16 %v1502_v14  ;;  %v1503_v46 = vunpack.i.l.bf16 %v1502_v14 }
 0x1db   : > { %v1517_v25 = vpop.permute.xlu1 %1516  ;;  %v1532_v57 = vpop.permute.xlu0 %1531 }
 0x1dc   : > { %v1519_v32 = vunpack.i.h.bf16 %v1517_v25  ;;  %v1518_v33 = vunpack.i.l.bf16 %v1517_v25  ;;  %v1534_v62 = vunpack.i.h.bf16 %v1532_v57  ;;  %v1533_v63 = vunpack.i.l.bf16 %v1532_v57 }
 0x1de   : > { %v857_v39 = vsel %vm855_vm10, %v854_v35, %v1519_v32  ;;  %v856_v40 = vsel %vm855_vm10, %v853_v36, %v1518_v33 }
 0x1df   : > { %v859_v41 = vsel %vm858_vm11, %v856_v40, %v1528_v38  ;;  %v860_v42 = vsel %vm858_vm11, %v857_v39, %v1529_v37  ;;  %v1522_v43 = vpop.permute.xlu1 %1521 }
 0x1e0   : > { %v862_v48 = vsel %vm861_vm12, %v859_v41, %v1503_v46  ;;  %v863_v49 = vsel %vm861_vm12, %v860_v42, %v1504_v44  ;;  %v1524_v52 = vunpack.i.h.bf16 %v1522_v43  ;;  %v1523_v53 = vunpack.i.l.bf16 %v1522_v43 }
 0x1e1   : > { %v865_v54 = vsel %vm864_vm13, %v862_v48, %v1508_v51  ;;  %v866_v55 = vsel %vm864_vm13, %v863_v49, %v1509_v50 }
 0x1e2   : > { %v868_v58 = vsel %vm867_vm14, %v865_v54, %v1523_v53  ;;  %v869_v59 = vsel %vm867_vm14, %v866_v55, %v1524_v52 }
 0x1e3   : > { %v1537_v56 = vpop.permute.xlu1 %1536  ;;  %v871_v1 = vsel %vm870_vm15, %v868_v58, %v1533_v63  ;;  %v872_v2 = vsel %vm870_vm15, %v869_v59, %v1534_v62 }
 0x1e4   : > { %v1539_v60 = vunpack.i.h.bf16 %v1537_v56  ;;  %v1538_v61 = vunpack.i.l.bf16 %v1537_v56 }
 0x1e6   : > { %v874_v5 = vsel %vm873_vm1, %v871_v1, %v1538_v61  ;;  %v875_v6 = vsel %vm873_vm1, %v872_v2, %v1539_v60 }
 0x23b   : > { %v1542_v0 = vpop.permute.xlu0 %1541 }
 0x23c   : > { %v1544_v3 = vunpack.i.h.bf16 %v1542_v0  ;;  %v1543_v4 = vunpack.i.l.bf16 %v1542_v0 }
 0x23e   : > { %v915_v7 = vsel %vm914_vm2, %v874_v5, %v1543_v4  ;;  %v916_v8 = vsel %vm914_vm2, %v875_v6, %v1544_v3 }
 0x23f   : > { %v1353_v9 = vpack.c.bf16 %v916_v8, %v915_v7 }
 0x241   : > { %1354 = vmatpush3.bf16.msra.mxu1 %v1353_v9 }
 0x244   : > { %1346 = vmatmul.mubr.msk.f32.vlgmr.msra.gmra.mrb[18].mxu1 %vm325_vm0, %v298_v10  ;;  %vm1033_vm0 = vcmask 193536  }
 0x317   : > { %v986_v11 = vpop.f32.mrb[18].mxu1 }
 0x318   : > { %992 = vrot.lane.b32.xlu0 %v986_v11, %s1718_s7  ;;  %v990_v12 = vmul.f32 %v986_v11, %v986_v11  ;;  %v1347_v45 = vpop.f32.mrb[19].mxu1 }
 0x31a   : > { %997 = vrot.lane.b32.xlu1 %v990_v12, %s1707_s13  ;;  %s1063_s13 = sshll.u32 %s279_s8, 4  ;;  %s2090_s13 = int_to_ptr.vmem [resolvable:$true] %s1063_s13 }
 0x31b   : > { %s1607_s6 = scalar_lea.vmem %s2090_s13, 128  ;;  %p1614_p7 = scmp.lt.s32.totalorder %s2090_s13, %s1612_s22 }
 0x31c   : > { %p1608_p0 = scmp.ne.s32.totalorder %s2090_s13, %s1607_s6 }
 0x31e   : > { %p1609_p12 = pnand %p1608_p0, %p2154_p3 }
 0x320   : > { %p1610_p13 = pneg %p1609_p12 }
 0x38a   : > { %v993_v13 = vpop.permute.xlu0 %992 }
 0x38b   : > { %v995_v14 = vmul.f32 %v993_v13, %v986_v11 }
 0x38c   : > { %v998_v47 = vpop.permute.xlu1 %997 }
 0x38d   : > { %v1000_v15 = vsub.f32 %v986_v11, %v998_v47  ;;  %1002 = vrot.lane.b32.xlu0 %v995_v14, %s1717_s27  ;;  %v1006_v28 = vmul.f32 2.0, %v995_v14  ;;  %s1049_s27 = scalar_lea.sflag [#allocation4], %s1915_s14 }
 0x38f   : > { %1021 = vrot.lane.b32.xlu1 %v1000_v15, %s1718_s7  ;;  %v1007_v30 = vadd.f32 0.0001, %v1006_v28 }
 0x393   : > { %1015 = vrot.lane.b32.xlu1 %v990_v12, %s1718_s7  ;;  %s1613_s7 = scalar_lea.vmem %s1612_s22, 256 }
 0x394   : > { %p1615_p10 = scmp.lt.s32.totalorder %s1613_s7, %s1607_s6 }
 0x396   : > { %p1616_p9 = por %p1615_p10, %p1614_p7 }
 0x398   : > { %p1617_p11 = pnand %p1616_p9, %p1610_p13 }
 0x3ff   : > { %v1003_v16 = vpop.permute.xlu0 %1002 }
 0x400   : > { %v1005_v17 = vsub.f32 %v986_v11, %v1003_v16 }
 0x401   : > { %v1022_v18 = vpop.permute.xlu1 %1021 }
 0x402   : > { %v1008_v19 = vmul.f32 2.0, %v1005_v17  ;;  %v1024_v20 = vadd.f32 %v1022_v18, %v1000_v15 }
 0x404   : > { %v1009_v21 = vadd.f32 0.0009, %v1008_v19  ;;  %v1025_v22 = vadd.f32 0.0009, %v1024_v20 }
 0x405   : > { %v1016_v23 = vpop.permute.xlu1 %1015 }
 0x406   : > { %1011 = vrot.lane.b32.xlu1 %v1009_v21, %s1719_s21  ;;  %1027 = vrot.lane.b32.xlu0 %v1025_v22, %s1720_s12  ;;  %v1018_v24 = vadd.f32 %v1016_v23, %v990_v12 }
 0x408   : > { %v1019_v25 = vadd.f32 0.0001, %v1018_v24 }
 0x478   : > { %v1028_v26 = vpop.permute.xlu0 %1027  ;;  %v1012_v29 = vpop.permute.xlu1 %1011 }
 0x479   : > { %v1030_v27 = vmul.f32 %v1028_v26, %v1019_v25  ;;  %v1014_v31 = vmul.f32 %v1012_v29, %v1007_v30 }
 0x47b   : > { %1545 = vrcp.f32 %v1030_v27 }
 0x485   : > { %v1546_v32 = vpop.eup %1545 }
 0x486   : > { %v1032_v33 = vmul.f32 %v1546_v32, %v1014_v31 }
 0x488   : > { %v1034_v34 = vsel %vm1033_vm0, %v1032_v33, 0.0 }
 0x489   : > { %1035 = vadd.xlane.f32.xlu0 %v1034_v34 }
 0x516   : > { %v1036_v35 = vpop.xlane.xlu0 %1035 }
 0x517   : > { %v1037_v36 = vrot.slane %v1036_v35, 4 }
 0x519   : > { %v1038_v37 = vadd.f32 %v1037_v36, %v1036_v35 }
 0x51b   : > { %v1039_v38 = vrot.slane %v1038_v37, 2 }
 0x51d   : > { %v1040_v39 = vadd.f32 %v1039_v38, %v1038_v37 }
 0x51f   : > { %v1041_v40 = vrot.slane %v1040_v39, 1 }
 0x521   : > { %v1042_v41 = vadd.f32 %v1041_v40, %v1040_v39 }
 0x523   : > { %1357 = vpush %v1042_v41 }
 0x554   : > { %s1358_s25 = spop %1357 }
 0x555   : > { %s1044_s9 = smul.f32 0.0069444445, %s1358_s25 }
 0x557   : > { %v1045_v42 = vstv %s1044_s9 }
 0x558   : > { %1047 = vst [vmem:[%s279_s8] sm:$0xff] %v1045_v42 }
 0x559   : > { %1620 = shalt.err (!%p1617_p11)
}
 0x55a   : > { %s1621_s14 = scalar_lea.hbm %s2088_s10, 128  ;;  %s1625_s26 = scalar_lea.hbm %s2141_s4, 256 }
 0x55b   : > { %p1622_p1 = scmp.ne.s32.totalorder %s2088_s10, %s1621_s14  ;;  %p1626_p5 = scmp.lt.u32.totalorder %s2088_s10, %s2141_s4 }
 0x55c   : > { %p1627_p4 = scmp.lt.u32.totalorder %s1625_s26, %s1621_s14  ;;  %p1629_p0 = scmp.lt.u32.totalorder %s1621_s14, %s2088_s10 }
 0x55d   : > { %p1623_p6 = pnand %p1622_p1, %p2154_p3 }
 0x55e   : > { %p1628_p8 = por %p1627_p4, %p1626_p5 }
 0x55f   : > { %p1624_p2 = pneg %p1623_p6 }
 0x560   : > { %p1630_p12 = por %p1629_p0, %p1628_p8 }
 0x562   : > { %p1631_p13 = pnand %p1630_p12, %p1624_p2 }
 0x564   : > { %1634 = shalt.err (!%p1631_p13)
}
 0x565   : > { %1363 = dma.vmem_to_hbm [thread:$0]  (%p2154_p3), %s2090_s13, 128, %s2088_s10, %s1049_s27  }
 0x566 PF: > { %s1075_s25 = sand.u32 1, %s1673_s15   ;;  %p2155_p7 = scmp.ne.s32.totalorder %s2148_s30, 0 }
 0x567   : > { %p2156_p10 = scmp.ge.s32.totalorder %s1693_s20, 2  ;;  %s1076_s9 = scalar_lea.sflag [#allocation4], %s1075_s25 }
 0x569   : > { %p1373_p9 = pnand %p2156_p10, %p2155_p7 }
 0x56b   : > { %1668 = dma.done.wait (!%p1373_p9), %s1076_s9, 128  }
 0x56c   : > { %1670 = vsyncadd (!%p1373_p9), %s1076_s9, 4294967168  ;;  %s23_s20 = sadd.s32 1, %s1693_s20   ;;  %s2157_s15 = smov %s1677_s16 }
 0x56d   : > { %p20_p11 = scmp.ge.s32.totalorder %s23_s20, 4   ;;  %s2158_s16 = smov %s1681_s17 }
 0x56e   : > { %s2159_s17 = smov %s1803_s29  ;;  %s2160_s18 = smov %s1689_s19 }
 0x56f   : > { %s2161_s19 = smov %s2163_s23  ;;  %22 = sbr.rel (!%p20_p11) target bundleno = 8 (0x8), region = 94 }
 0x576   :  { %1081 = vsyncpa [#allocation3], 1 }
 0x577   :  { %1083 = vsyncpa [#allocation3 + $0x1], 1 }
 0x578   :  { %1084 = vsyncpa [#allocation6], 1 }
 0x579   :  { %1086 = vsyncpa [#allocation6 + $0x1], 1 }
 0x57a   :  { %1087 = vsyncpa [#allocation4], 1 }
 0x57b   :  { %1089 = vsyncpa [#allocation4 + $0x1], 1 }

</bundles_post_ra>
